<compile_context>
chip_gen: v5e
topology: v5e:2x2
jax: 0.10.0
libtpu: 0.0.40
codegen_flags: <defaults>
</compile_context>

<pallas_src>
import functools

import jax
import jax.numpy as jnp
from jax.experimental import pallas as pl
from jax.experimental.pallas import tpu as pltpu


def _self_attention_kernel(x_ref, w_ref, bias_ref, o_ref, qkv_ref, *,
                           num_head, d_model, q_tile):
    """One (batch, query-tile) grid step.

    x_ref:    [L, D]    full input sequence (features on the lane axis)
    w_ref:    [D, 3D]   fused [Wq*scale | Wk | Wv] projection weight
    bias_ref: [1, L]    additive key mask bias (0 valid, -1e30 masked)
    o_ref:    [tq, D]   output tile
    qkv_ref:  [L, 3D]   VMEM scratch caching the fused QKV projection
    """
    D = d_model
    dh = D // num_head
    qi = pl.program_id(1)

    # Fused QKV projection for the whole sequence, once per batch element.
    # (The query-tile grid axis is "arbitrary", so qi == 0 always runs first
    # and the scratch persists across subsequent qi steps of the same batch.)
    @pl.when(qi == 0)
    def _():
        qkv_ref[...] = jnp.dot(
            x_ref[...], w_ref[...],
            preferred_element_type=jnp.float32).astype(qkv_ref.dtype)

    q_start = pl.multiple_of(qi * q_tile, q_tile)
    bias = bias_ref[...].astype(jnp.float32)                        # [1, L]

    head_outs = []
    for h in range(num_head):                       # static unroll over heads
        lo = h * dh
        # Lane slices of the cached QKV buffer -- no head split/merge relayout.
        q_h = qkv_ref[pl.ds(q_start, q_tile), pl.ds(lo, dh)]        # [tq, dh]
        k_h = qkv_ref[:, pl.ds(D + lo, dh)]                         # [L,  dh]
        v_h = qkv_ref[:, pl.ds(2 * D + lo, dh)]                     # [L,  dh]

        logits = jnp.einsum('qd,kd->qk', q_h, k_h,
                            preferred_element_type=jnp.float32)     # [tq, L]
        logits = logits + bias                                      # additive mask

        # Numerically-stable softmax over the key axis.
        lmax = jnp.max(logits, axis=-1, keepdims=True)
        e = jnp.exp(logits - lmax)
        denom = jnp.sum(e, axis=-1, keepdims=True)
        w = e * pl.reciprocal(denom, approx=True)

        head_outs.append(jnp.dot(w.astype(v_h.dtype), v_h,
                                 preferred_element_type=jnp.float32))  # [tq, dh]

    # Combine heads (channel-contiguous per head, matching combine_last_two_dim)
    # and emit a single lane-dense [tq, D] store.
    o_ref[...] = jnp.concatenate(head_outs, axis=-1).astype(o_ref.dtype)


def self_attention_nld(x_bld, mask, wq_conv, wm_conv, num_head, *, q_tile=None):
    """Core entry point in lane-dense layout.

    x_bld: [B, L, D].  mask: [B, L] 0/1.  Returns [B, L, D].
    """
    B, L, D = x_bld.shape
    dh = D // num_head

    if q_tile is None:
        q_tile = L
        for t in (256, 128, 64, 32, 16, 8):
            if t <= L and L % t == 0:
                q_tile = t
                break
    assert L % q_tile == 0, "q_tile must divide L"

    # kernel-size-1 Conv1d == matmul by W[:, :, 0]^T; fuse Q/K/V weights into
    # one [D, 3D] matrix and fold the per-head scale into the Q columns.
    wq_t = jnp.transpose(wq_conv[:, :, 0], (1, 0)) * (dh ** -0.5)       # [D, D]
    wm_t = jnp.transpose(wm_conv[:, :, 0], (1, 0))                      # [D, 2D]
    w_qkv = jnp.concatenate([wq_t, wm_t], axis=-1).astype(x_bld.dtype)  # [D, 3D]

    # additive mask bias: 0 where valid, -1e30 where masked
    mask_bias = ((mask.astype(jnp.float32) - 1.0) * 1e30).reshape(B, 1, L)

    grid = (B, L // q_tile)
    return pl.pallas_call(
        functools.partial(_self_attention_kernel, num_head=num_head,
                          d_model=D, q_tile=q_tile),
        out_shape=jax.ShapeDtypeStruct((B, L, D), x_bld.dtype),
        grid=grid,
        in_specs=[
            # x: full sequence, constant over qi (no re-DMA across qi steps)
            pl.BlockSpec((None, L, D), lambda b, qi: (b, 0, 0)),
            # fused QKV weight, shared by the whole grid
            pl.BlockSpec((D, 3 * D), lambda b, qi: (0, 0)),
            # additive mask bias
            pl.BlockSpec((None, 1, L), lambda b, qi: (b, 0, 0)),
        ],
        out_specs=pl.BlockSpec((None, q_tile, D), lambda b, qi: (b, qi, 0)),
        scratch_shapes=[pltpu.VMEM((L, 3 * D), x_bld.dtype)],       # cached QKV
        # qi must stay "arbitrary": the QKV scratch written at qi == 0 is
        # reused by later query tiles.  Batch stays "parallel" (megacore /
        # v7x 2-TC sharding).
        compiler_params=pltpu.CompilerParams(
            dimension_semantics=("parallel", "arbitrary")),
    )(x_bld, w_qkv, mask_bias)


def self_attention_forward(x_ncl, mask, wq_conv, wm_conv, num_head, *, q_tile=None):
    """PyTorch-layout wrapper: x_ncl [B, D, L] in, [B, D, L] out.

    The two transposes below are full HBM passes; callers that already keep
    activations in [B, L, D] should call `self_attention_nld` directly.
    """
    x = jnp.transpose(x_ncl, (0, 2, 1))                              # [B, L, D]
    out = self_attention_nld(x, mask, wq_conv, wm_conv, num_head, q_tile=q_tile)
    return jnp.transpose(out, (0, 2, 1))                             # [B, D, L]


def _reference(x_ncl, mask, wq_conv, wm_conv, num_head):
    """Pure-JAX reference mirroring the PyTorch forward (eval mode)."""
    B, D, L = x_ncl.shape
    dh = D // num_head
    x = jnp.transpose(x_ncl, (0, 2, 1)).astype(jnp.float32)          # [B, L, D]
    q = jnp.einsum('bld,od->blo', x, wq_conv[:, :, 0])
    mem = jnp.einsum('bld,od->blo', x, wm_conv[:, :, 0])
    k, v = mem[..., :D], mem[..., D:]

    def split(t):  # [B, L, D] -> [B, H, L, dh]
        return t.reshape(B, L, num_head, dh).transpose(0, 2, 1, 3)

    Q, K, V = split(q) * (dh ** -0.5), split(k), split(v)
    logits = jnp.einsum('bhqd,bhkd->bhqk', Q, K)
    m = mask.astype(jnp.float32).reshape(B, 1, 1, L)
    logits = logits * m + (1.0 - m) * (-1e30)
    w = jax.nn.softmax(logits, axis=-1)
    out = jnp.einsum('bhqk,bhkd->bhqd', w, V)
    out = out.transpose(0, 2, 1, 3).reshape(B, L, D)
    return jnp.transpose(out, (0, 2, 1))                             # [B, D, L]


if __name__ == "__main__":
    B, d_model, L, num_head = 2, 32, 16, 4

    key = jax.random.PRNGKey(0)
    kx, kq, km = jax.random.split(key, 3)

    x = jax.random.normal(kx, (B, d_model, L), dtype=jnp.float32)
    # Deterministic parameter init; exact init scheme is irrelevant for
    # kernel semantics, use scaled normal.
    wq_conv = jax.random.normal(kq, (d_model, d_model, 1), jnp.float32) * (d_model ** -0.5)
    wm_conv = jax.random.normal(km, (2 * d_model, d_model, 1), jnp.float32) * (d_model ** -0.5)

    # mask: 1 for valid positions, 0 for padding (last 4 positions of batch 1 masked)
    mask = jnp.ones((B, L), jnp.float32).at[1, L - 4:].set(0.0)

    # q_tile=8 -> two query tiles per batch element, exercising the tiled path
    # and the cached-QKV scratch reuse.
    out = self_attention_forward(x, mask, wq_conv, wm_conv, num_head, q_tile=8)
    out = jax.block_until_ready(out)

    ref = _reference(x, mask, wq_conv, wm_conv, num_head)
    assert out.shape == (B, d_model, L)
    err = jnp.max(jnp.abs(out - ref))
    assert jnp.allclose(out, ref, atol=2e-3, rtol=2e-3), f"max abs err {err}"

    print("KERNEL_OK")
</pallas_src>

<mosaic_0001>
module attributes {stable_mosaic.version = 11 : i64} {
  func.func @_self_attention_kernel(%arg0: i32, %arg1: i32, %arg2: memref<1x16x32xf32, #tpu.memory_space<vmem>>, %arg3: memref<32x96xf32, #tpu.memory_space<vmem>>, %arg4: memref<1x1x16xf32, #tpu.memory_space<vmem>>, %arg5: memref<1x8x32xf32, #tpu.memory_space<vmem>>, %arg6: memref<16x96xf32, #tpu.memory_space<vmem>>) attributes {dimension_semantics = [#tpu.dimension_semantics<parallel>, #tpu.dimension_semantics<arbitrary>], iteration_bounds = array<i64: 2, 2>, scalar_prefetch = 0 : i64, scratch_operands = 1 : i64, tpu.core_type = #tpu.core_type<tc>, window_params = [{transform_indices = @transform_0, window_bounds = array<i64: 1, 16, 32>}, {pipeline_mode = #tpu.pipeline_mode<synchronous>, transform_indices = @transform_1, window_bounds = array<i64: 32, 96>}, {transform_indices = @transform_2, window_bounds = array<i64: 1, 1, 16>}, {transform_indices = @transform_3, window_bounds = array<i64: 1, 8, 32>}]} {
    %c0_i32 = arith.constant 0 : i32
    %0 = arith.cmpi eq, %arg1, %c0_i32 : i32
    %1 = arith.extui %0 : i1 to i32
    %c0_i32_0 = arith.constant 0 : i32
    %2 = arith.cmpi ne, %1, %c0_i32_0 : i32
    scf.if %2 {
      %c0_30 = arith.constant 0 : index
      %c0_31 = arith.constant 0 : index
      %c0_32 = arith.constant 0 : index
      %83 = vector.load %arg2[%c0_30, %c0_31, %c0_32] : memref<1x16x32xf32, #tpu.memory_space<vmem>>, vector<1x16x32xf32>
      %84 = vector.shape_cast %83 : vector<1x16x32xf32> to vector<16x32xf32>
      %c0_33 = arith.constant 0 : index
      %c0_34 = arith.constant 0 : index
      %85 = vector.load %arg3[%c0_33, %c0_34] : memref<32x96xf32, #tpu.memory_space<vmem>>, vector<32x96xf32>
      %cst_35 = arith.constant dense<0.000000e+00> : vector<16x96xf32>
      %86 = tpu.matmul %84, %85, %cst_35 {dimension_numbers = #tpu.dot_dimension_numbers<[1], [0], [0], [1], [0, 0, 1, 1], [], []>} : vector<16x32xf32>, vector<32x96xf32>, vector<16x96xf32> -> vector<16x96xf32>
      %c0_36 = arith.constant 0 : index
      %c0_37 = arith.constant 0 : index
      %87 = vector.load %arg6[%c0_36, %c0_37] : memref<16x96xf32, #tpu.memory_space<vmem>>, vector<16x96xf32>
      tpu.vector_store %arg6[%c0_36, %c0_37], %86 {strides = array<i32>} : memref<16x96xf32, #tpu.memory_space<vmem>>, vector<16x96xf32>,
    } else {
    }
    %c8_i32 = arith.constant 8 : i32
    %3 = arith.muli %arg1, %c8_i32 : i32
    %4 = tpu.assume_multiple %3, 8 : i32
    %c0 = arith.constant 0 : index
    %c0_1 = arith.constant 0 : index
    %c0_2 = arith.constant 0 : index
    %5 = vector.load %arg4[%c0, %c0_1, %c0_2] : memref<1x1x16xf32, #tpu.memory_space<vmem>>, vector<1x1x16xf32>
    %6 = vector.shape_cast %5 : vector<1x1x16xf32> to vector<1x16xf32>
    %7 = arith.index_cast %4 : i32 to index
    %c0_3 = arith.constant 0 : index
    %8 = vector.load %arg6[%7, %c0_3] : memref<16x96xf32, #tpu.memory_space<vmem>>, vector<8x8xf32>
    %c0_4 = arith.constant 0 : index
    %c32 = arith.constant 32 : index
    %9 = vector.load %arg6[%c0_4, %c32] : memref<16x96xf32, #tpu.memory_space<vmem>>, vector<16x8xf32>
    %c0_5 = arith.constant 0 : index
    %c64 = arith.constant 64 : index
    %10 = vector.load %arg6[%c0_5, %c64] : memref<16x96xf32, #tpu.memory_space<vmem>>, vector<16x8xf32>
    "tpu.trace_start"() <{level = 10 : i32, message = "qd,kd->qk"}> : () -> ()
    %cst = arith.constant dense<0.000000e+00> : vector<8x16xf32>
    %11 = tpu.matmul %8, %9, %cst {dimension_numbers = #tpu.dot_dimension_numbers<[1], [1], [0], [0], [0, 0, 1, 0], [], []>} : vector<8x8xf32>, vector<16x8xf32>, vector<8x16xf32> -> vector<8x16xf32>
    "tpu.trace_stop"() : () -> ()
    %12 = vector.broadcast %6 : vector<1x16xf32> to vector<8x16xf32>
    %13 = arith.addf %11, %12 : vector<8x16xf32>
    %cst_6 = arith.constant dense<0xFF800000> : vector<8xf32>
    %14 = vector.multi_reduction <maximumf>, %13, %cst_6 [1] : vector<8x16xf32> to vector<8xf32>
    %15 = vector.shape_cast %14 : vector<8xf32> to vector<8x1xf32>
    %16 = vector.broadcast %15 : vector<8x1xf32> to vector<8x16xf32>
    %17 = arith.subf %13, %16 : vector<8x16xf32>
    %18 = math.exp %17 : vector<8x16xf32>
    %cst_7 = arith.constant dense<0.000000e+00> : vector<8xf32>
    %19 = vector.multi_reduction <add>, %18, %cst_7 [1] : vector<8x16xf32> to vector<8xf32>
    %20 = vector.shape_cast %19 : vector<8xf32> to vector<8x1xf32>
    %21 = tpu.reciprocal %20 {approx = true} : vector<8x1xf32> -> vector<8x1xf32>
    %22 = vector.broadcast %21 : vector<8x1xf32> to vector<8x16xf32>
    %23 = arith.mulf %18, %22 : vector<8x16xf32>
    %cst_8 = arith.constant dense<0.000000e+00> : vector<8x8xf32>
    %24 = tpu.matmul %23, %10, %cst_8 {dimension_numbers = #tpu.dot_dimension_numbers<[1], [0], [0], [1], [0, 0, 1, 1], [], []>} : vector<8x16xf32>, vector<16x8xf32>, vector<8x8xf32> -> vector<8x8xf32>
    %25 = arith.index_cast %4 : i32 to index
    %c8 = arith.constant 8 : index
    %26 = vector.load %arg6[%25, %c8] : memref<16x96xf32, #tpu.memory_space<vmem>>, vector<8x8xf32>
    %c0_9 = arith.constant 0 : index
    %c40 = arith.constant 40 : index
    %27 = vector.load %arg6[%c0_9, %c40] : memref<16x96xf32, #tpu.memory_space<vmem>>, vector<16x8xf32>
    %c0_10 = arith.constant 0 : index
    %c72 = arith.constant 72 : index
    %28 = vector.load %arg6[%c0_10, %c72] : memref<16x96xf32, #tpu.memory_space<vmem>>, vector<16x8xf32>
    "tpu.trace_start"() <{level = 10 : i32, message = "qd,kd->qk"}> : () -> ()
    %cst_11 = arith.constant dense<0.000000e+00> : vector<8x16xf32>
    %29 = tpu.matmul %26, %27, %cst_11 {dimension_numbers = #tpu.dot_dimension_numbers<[1], [1], [0], [0], [0, 0, 1, 0], [], []>} : vector<8x8xf32>, vector<16x8xf32>, vector<8x16xf32> -> vector<8x16xf32>
    "tpu.trace_stop"() : () -> ()
    %30 = vector.broadcast %6 : vector<1x16xf32> to vector<8x16xf32>
    %31 = arith.addf %29, %30 : vector<8x16xf32>
    %cst_12 = arith.constant dense<0xFF800000> : vector<8xf32>
    %32 = vector.multi_reduction <maximumf>, %31, %cst_12 [1] : vector<8x16xf32> to vector<8xf32>
    %33 = vector.shape_cast %32 : vector<8xf32> to vector<8x1xf32>
    %34 = vector.broadcast %33 : vector<8x1xf32> to vector<8x16xf32>
    %35 = arith.subf %31, %34 : vector<8x16xf32>
    %36 = math.exp %35 : vector<8x16xf32>
    %cst_13 = arith.constant dense<0.000000e+00> : vector<8xf32>
    %37 = vector.multi_reduction <add>, %36, %cst_13 [1] : vector<8x16xf32> to vector<8xf32>
    %38 = vector.shape_cast %37 : vector<8xf32> to vector<8x1xf32>
    %39 = tpu.reciprocal %38 {approx = true} : vector<8x1xf32> -> vector<8x1xf32>
    %40 = vector.broadcast %39 : vector<8x1xf32> to vector<8x16xf32>
    %41 = arith.mulf %36, %40 : vector<8x16xf32>
    %cst_14 = arith.constant dense<0.000000e+00> : vector<8x8xf32>
    %42 = tpu.matmul %41, %28, %cst_14 {dimension_numbers = #tpu.dot_dimension_numbers<[1], [0], [0], [1], [0, 0, 1, 1], [], []>} : vector<8x16xf32>, vector<16x8xf32>, vector<8x8xf32> -> vector<8x8xf32>
    %43 = arith.index_cast %4 : i32 to index
    %c16 = arith.constant 16 : index
    %44 = vector.load %arg6[%43, %c16] : memref<16x96xf32, #tpu.memory_space<vmem>>, vector<8x8xf32>
    %c0_15 = arith.constant 0 : index
    %c48 = arith.constant 48 : index
    %45 = vector.load %arg6[%c0_15, %c48] : memref<16x96xf32, #tpu.memory_space<vmem>>, vector<16x8xf32>
    %c0_16 = arith.constant 0 : index
    %c80 = arith.constant 80 : index
    %46 = vector.load %arg6[%c0_16, %c80] : memref<16x96xf32, #tpu.memory_space<vmem>>, vector<16x8xf32>
    "tpu.trace_start"() <{level = 10 : i32, message = "qd,kd->qk"}> : () -> ()
    %cst_17 = arith.constant dense<0.000000e+00> : vector<8x16xf32>
    %47 = tpu.matmul %44, %45, %cst_17 {dimension_numbers = #tpu.dot_dimension_numbers<[1], [1], [0], [0], [0, 0, 1, 0], [], []>} : vector<8x8xf32>, vector<16x8xf32>, vector<8x16xf32> -> vector<8x16xf32>
    "tpu.trace_stop"() : () -> ()
    %48 = vector.broadcast %6 : vector<1x16xf32> to vector<8x16xf32>
    %49 = arith.addf %47, %48 : vector<8x16xf32>
    %cst_18 = arith.constant dense<0xFF800000> : vector<8xf32>
    %50 = vector.multi_reduction <maximumf>, %49, %cst_18 [1] : vector<8x16xf32> to vector<8xf32>
    %51 = vector.shape_cast %50 : vector<8xf32> to vector<8x1xf32>
    %52 = vector.broadcast %51 : vector<8x1xf32> to vector<8x16xf32>
    %53 = arith.subf %49, %52 : vector<8x16xf32>
    %54 = math.exp %53 : vector<8x16xf32>
    %cst_19 = arith.constant dense<0.000000e+00> : vector<8xf32>
    %55 = vector.multi_reduction <add>, %54, %cst_19 [1] : vector<8x16xf32> to vector<8xf32>
    %56 = vector.shape_cast %55 : vector<8xf32> to vector<8x1xf32>
    %57 = tpu.reciprocal %56 {approx = true} : vector<8x1xf32> -> vector<8x1xf32>
    %58 = vector.broadcast %57 : vector<8x1xf32> to vector<8x16xf32>
    %59 = arith.mulf %54, %58 : vector<8x16xf32>
    %cst_20 = arith.constant dense<0.000000e+00> : vector<8x8xf32>
    %60 = tpu.matmul %59, %46, %cst_20 {dimension_numbers = #tpu.dot_dimension_numbers<[1], [0], [0], [1], [0, 0, 1, 1], [], []>} : vector<8x16xf32>, vector<16x8xf32>, vector<8x8xf32> -> vector<8x8xf32>
    %61 = arith.index_cast %4 : i32 to index
    %c24 = arith.constant 24 : index
    %62 = vector.load %arg6[%61, %c24] : memref<16x96xf32, #tpu.memory_space<vmem>>, vector<8x8xf32>
    %c0_21 = arith.constant 0 : index
    %c56 = arith.constant 56 : index
    %63 = vector.load %arg6[%c0_21, %c56] : memref<16x96xf32, #tpu.memory_space<vmem>>, vector<16x8xf32>
    %c0_22 = arith.constant 0 : index
    %c88 = arith.constant 88 : index
    %64 = vector.load %arg6[%c0_22, %c88] : memref<16x96xf32, #tpu.memory_space<vmem>>, vector<16x8xf32>
    "tpu.trace_start"() <{level = 10 : i32, message = "qd,kd->qk"}> : () -> ()
    %cst_23 = arith.constant dense<0.000000e+00> : vector<8x16xf32>
    %65 = tpu.matmul %62, %63, %cst_23 {dimension_numbers = #tpu.dot_dimension_numbers<[1], [1], [0], [0], [0, 0, 1, 0], [], []>} : vector<8x8xf32>, vector<16x8xf32>, vector<8x16xf32> -> vector<8x16xf32>
    "tpu.trace_stop"() : () -> ()
    %66 = vector.broadcast %6 : vector<1x16xf32> to vector<8x16xf32>
    %67 = arith.addf %65, %66 : vector<8x16xf32>
    %cst_24 = arith.constant dense<0xFF800000> : vector<8xf32>
    %68 = vector.multi_reduction <maximumf>, %67, %cst_24 [1] : vector<8x16xf32> to vector<8xf32>
    %69 = vector.shape_cast %68 : vector<8xf32> to vector<8x1xf32>
    %70 = vector.broadcast %69 : vector<8x1xf32> to vector<8x16xf32>
    %71 = arith.subf %67, %70 : vector<8x16xf32>
    %72 = math.exp %71 : vector<8x16xf32>
    %cst_25 = arith.constant dense<0.000000e+00> : vector<8xf32>
    %73 = vector.multi_reduction <add>, %72, %cst_25 [1] : vector<8x16xf32> to vector<8xf32>
    %74 = vector.shape_cast %73 : vector<8xf32> to vector<8x1xf32>
    %75 = tpu.reciprocal %74 {approx = true} : vector<8x1xf32> -> vector<8x1xf32>
    %76 = vector.broadcast %75 : vector<8x1xf32> to vector<8x16xf32>
    %77 = arith.mulf %72, %76 : vector<8x16xf32>
    %cst_26 = arith.constant dense<0.000000e+00> : vector<8x8xf32>
    %78 = tpu.matmul %77, %64, %cst_26 {dimension_numbers = #tpu.dot_dimension_numbers<[1], [0], [0], [1], [0, 0, 1, 1], [], []>} : vector<8x16xf32>, vector<16x8xf32>, vector<8x8xf32> -> vector<8x8xf32>
    %79 = tpu.concatenate %24, %42, %60, %78 in 1 : vector<8x8xf32>, vector<8x8xf32>, vector<8x8xf32>, vector<8x8xf32> -> vector<8x32xf32>
    %c0_27 = arith.constant 0 : index
    %c0_28 = arith.constant 0 : index
    %c0_29 = arith.constant 0 : index
    %80 = vector.load %arg5[%c0_27, %c0_28, %c0_29] : memref<1x8x32xf32, #tpu.memory_space<vmem>>, vector<1x8x32xf32>
    %81 = vector.shape_cast %80 : vector<1x8x32xf32> to vector<8x32xf32>
    %82 = vector.shape_cast %79 : vector<8x32xf32> to vector<1x8x32xf32>
    tpu.vector_store %arg5[%c0_27, %c0_28, %c0_29], %82 {strides = array<i32>} : memref<1x8x32xf32, #tpu.memory_space<vmem>>, vector<1x8x32xf32>,
    return
  }
  func.func @transform_0(%arg0: i32, %arg1: i32) -> (i32, i32, i32) {
    %c0_i32 = arith.constant 0 : i32
    %c0_i32_0 = arith.constant 0 : i32
    %c0_i32_1 = arith.constant 0 : i32
    return %arg0, %c0_i32, %c0_i32_0 : i32, i32, i32
  }
  func.func @transform_1(%arg0: i32, %arg1: i32) -> (i32, i32) {
    %c0_i32 = arith.constant 0 : i32
    %c0_i32_0 = arith.constant 0 : i32
    %c0_i32_1 = arith.constant 0 : i32
    return %c0_i32, %c0_i32_0 : i32, i32
  }
  func.func @transform_2(%arg0: i32, %arg1: i32) -> (i32, i32, i32) {
    %c0_i32 = arith.constant 0 : i32
    %c0_i32_0 = arith.constant 0 : i32
    %c0_i32_1 = arith.constant 0 : i32
    return %arg0, %c0_i32, %c0_i32_0 : i32, i32, i32
  }
  func.func @transform_3(%arg0: i32, %arg1: i32) -> (i32, i32, i32) {
    %c0_i32 = arith.constant 0 : i32
    %c0_i32_0 = arith.constant 0 : i32
    return %arg0, %arg1, %c0_i32 : i32, i32, i32
  }
}

</mosaic_0001>

<bundles_post_ra>
// kernel: tpu_custom_call.1
= control target key start
LH: loop header
LB: loop body
LE: loop exit
PB: predicated region body
PF: predicated region fallthrough
CT: control target
= control target key end

     0   :  { %s1512_s0 = inlined_call_operand.hbm [shape: f32[2,16,32], index: 0, kind: input, shape index: {}]   ;;  %s1513_s1 = inlined_call_operand.hbm [shape: f32[32,96], index: 1, kind: input, shape index: {}]   ;;  %s1514_s2 = inlined_call_operand.hbm [shape: f32[2,1,16], index: 2, kind: input, shape index: {}]   ;;  %s1515_s3 = inlined_call_operand.hbm [shape: f32[2,16,32], index: 3, kind: output, shape index: {}]  }
   0x1   :  { %1522 = sst [smem:[#allocation18_spill]] %s1512_s0 }
   0x2   :  { %1523 = sst [smem:[#allocation19_spill]] %s1513_s1 }
   0x3   :  { %1524 = sst [smem:[#allocation20_spill]] %s1514_s2 }
   0x4   :  { %8 = vsyncpa [#allocation4], 0 }
   0x5   :  { %10 = vsyncpa [#allocation4 + $0x1], 0 }
   0x6   :  { %11 = vsyncpa [#allocation7], 0 }
   0x7   :  { %12 = vsyncpa [#allocation5], 0 }
   0x8   :  { %14 = vsyncpa [#allocation5 + $0x1], 0  ;;  %s1234_s12 = smov 0   ;;  %s1236_s13 = smov 0  }
   0x9   :  { %s1238_s14 = smov 0   ;;  %s1240_s15 = smov 0  }
   0xa   :  { %s1242_s16 = smov 0   ;;  %s1244_s17 = smov 0  }
   0xb   :  { %s1246_s18 = smov 0   ;;  %s1248_s19 = smov 0  }
   0xc   :  { %s1250_s20 = smov 0   ;;  %s1252_s21 = smov 0  }
   0xd   :  { %s1254_s22 = smov 0  }
   0xe LB: > { %1525 = sst [smem:[#allocation14_spill]] %s1187_s20  ;;  %s29_s23 = sadd.s32 1, %s1187_s20  ;;  %s1195_s22 = sphi %s1254_s22, %s20_s22   ;;  %s1191_s21 = sphi %s1252_s21, %s1552_s21   ;;  %s1187_s20 = sphi %s1250_s20, %s1543_s20   ;;  %s1183_s19 = sphi %s1248_s19, %s1551_s19   ;;  %s1179_s18 = sphi %s1246_s18, %s1542_s18   ;;  %s1175_s17 = sphi %s1244_s17, %s1550_s17   ;;  %s1171_s16 = sphi %s1242_s16, %s1549_s16   ;;  %s1167_s15 = sphi %s1240_s15, %s1548_s15   ;;  %s1163_s14 = sphi %s1238_s14, %s1547_s14   ;;  %s1159_s13 = sphi %s1236_s13, %s1546_s13   ;;  %s1155_s12 = sphi %s1234_s12, %s1545_s12  }
   0xf   : > { %s32_s24 = sadd.s32 1, %s1191_s21  ;;  %p30_p0 = scmp.ge.s32.totalorder %s29_s23, 2 }
  0x10   : > { %s39_s25 = sadd.s32 1, %s1175_s17  ;;  %p46_p1 = scmp.ne.s32.totalorder %s1175_s17, %s1171_s16 }
  0x11   : > { %p47_p2 = scmp.eq.s32.totalorder %s1195_s22, 0  ;;  %s1554_s23 = smov (%p30_p0, %s29_s23), 0 }
  0x12   : > { %1526 = sst [smem:[#allocation15_spill]] %s1554_s23  ;;  %s1556_s24 = smov (!%p30_p0, %s32_s24), %s1191_s21 }
  0x13   : > { %p1298_p3 = por %p47_p2, %p46_p1  ;;  %s110_s27 = ssub.s32 %s1187_s20, %s1554_s23 }
  0x14   : > { %p34_p4 = scmp.ge.s32.totalorder %s1556_s24, 2  ;;  %p830_p5 = scmp.lt.s32.totalorder %s1195_s22, 4 }
  0x15   : > { %s165_s28 = sand.u32 1, %s1195_s22   ;;  %s1518_s4 = sand.u32 1, %s1175_s17  }
  0x16   : > { %s1558_s24 = smov (%p34_p4, %s1556_s24), 0  ;;  %s767_s6 = sshll.u32 %s1518_s4, 4 }
  0x17   : > { %1528 = sst [smem:[#allocation16_spill]] %s1558_s24  ;;  %s36_s29 = ssub.s32 %s1191_s21, %s1558_s24 }
  0x18   : > { %p37_p6 = scmp.eq.s32.totalorder %s36_s29, 0  ;;  %s111_s30 = sor.u32 %s110_s27, %s36_s29 }
  0x19   : > { %p112_p7 = scmp.eq.s32.totalorder %s111_s30, 0  ;;  %s799_s7 = sshll.u32 %s1191_s21, 4 }
  0x1a   : > { %s1312_s5 = scalar_select %p37_p6, %s1175_s17, %s39_s25  }
  0x1b   : > { %s1530_s0 = sld [smem:[#allocation18_spill]]  ;;  %s169_s27 = scalar_lea.vmem [#allocation3], %s767_s6 }
  0x1c   : > { %1529 = sst [smem:[#allocation17_spill]] %s1312_s5  ;;  %s177_s29 = sshll.u32 %s169_s27, 4  ;;  %s178_s29 = int_to_ptr.vmem [resolvable:$true] %s177_s29 }
  0x1d   : > { %p1324_p8 = pnand %p830_p5, %p1298_p3  ;;  %s1328_s8 = scalar_lea.sflag [#allocation4], %s165_s28 }
  0x1e   : > { %s1517_s6 = smov 8   ;;  %s1337_s26 = sadd.s32 4294967295, %s1195_s22  }
  0x1f   : > { %s763_s9 = sadd.s32 4294967294, %s1195_s22   ;;  %p52_p9 = scmp.ne.s32.totalorder %s1171_s16, %s1167_s15 }
  0x20   : > { %p53_p10 = scmp.eq.s32.totalorder %s1337_s26, 0  ;;  %s114_s28 = sadd.s32 1, %s1163_s14 }
  0x21   : > { %s174_s10 = scalar_lea.hbm %s1530_s0, %s799_s7  ;;  %s1516_s7 = smov 128  }
  0x22   : > { %s175_s11 = sshll.u32 %s174_s10, 4  ;;  %p124_p11 = scmp.ne.s32.totalorder %s1163_s14, %s1159_s13  ;;  %s176_s11 = int_to_ptr.hbm [resolvable:$true] %s175_s11 }
  0x23   : > { %821 = dma.hbm_to_vmem [thread:$0]  (!%p1324_p8), %s176_s11, 256, %s178_s29, %s1328_s8, %s1516_s7, %s1516_s7, %s1517_s6  }
  0x24   : > { %p1348_p12 = por %p53_p10, %p52_p9  ;;  %p125_p13 = scmp.eq.s32.totalorder %s1337_s26, 3 }
  0x25   : > { %s1355_s11 = scalar_select %p112_p7, %s1163_s14, %s114_s28  }
  0x26   : > { %p1357_p0 = por %p125_p13, %p124_p11  ;;  %p130_p1 = scmp.ne.s32.totalorder %s1159_s13, %s1155_s12 }
  0x27   : > { %p131_p2 = scmp.eq.s32.totalorder %s763_s9, 3  ;;  %p764_p3 = scmp.ge.s32.totalorder %s1195_s22, 1 }
  0x28   : > { %p138_p4 = scmp.lt.s32.totalorder %s1195_s22, 5  ;;  %s1535_s1 = sld [smem:[#allocation19_spill]] }
  0x29   : > { %p1365_p5 = por %p131_p2, %p130_p1  ;;  %s1199_s9 = smov [#allocation6]  }
  0x2a   : > { %p1372_p6 = pnand %p764_p3, %p138_p4  ;;  %s151_s6 = sshll.u32 %s1199_s9, 4  ;;  %s152_s6 = int_to_ptr.vmem [resolvable:$true] %s151_s6 }
  0x2b   : > { %s1537_s2 = sld [smem:[#allocation20_spill]]  ;;  %s1538_s29 = sand.u32 1, %s1175_s17  }
  0x2c   : > { %p814_p7 = pneg %p1372_p6  ;;  %s1539_s20 = smov 8  }
  0x2d   : > { %s1540_s5 = smov 128   ;;  %s208_s0 = sand.u32 (!%p1372_p6), 1, %s1337_s26  }
  0x2e   : > { %s149_s30 = sshll.u32 %s1535_s1, 4  ;;  %p815_p9 = pnand %p814_p7, %p53_p10  ;;  %s150_s30 = int_to_ptr.hbm [resolvable:$true] %s149_s30 }
  0x2f   : > { %s190_s1 = scalar_lea.vmem [#allocation8], %s1538_s29  ;;  %s210_s4 = sand.u32 (!%p1372_p6), 1, %s1171_s16  }
  0x30   : > { %s197_s23 = sshll.u32 %s190_s1, 4  ;;  %206 = sbr.rel (%p1372_p6) target bundleno = 1379 (0x563), region = 32  ;;  %s198_s23 = int_to_ptr.vmem [resolvable:$true] %s197_s23 }
  0x31   : > { %s193_s24 = scalar_lea.hbm %s1537_s2, %s1191_s21  ;;  %s209_s9 = scalar_lea.sflag (!%p1372_p6), [#allocation4], %s208_s0 }
  0x32   : > { %s195_s7 = sshll.u32 %s193_s24, 4  ;;  %s771_s24 = sshll.u32 (!%p1372_p6), %s210_s4, 4  ;;  %s196_s7 = int_to_ptr.hbm [resolvable:$true] %s195_s7 }
  0x33   : > { %817 = dma.hbm_to_vmem [thread:$0]  (!%p815_p9), %s150_s30, 512, %s152_s6, [#allocation7], %s1540_s5, %s1540_s5, %s1539_s20  }
  0x34   : > { %824 = dma.hbm_to_vmem [thread:$0]  (!%p1324_p8), %s196_s7, 16, %s198_s23, %s1328_s8  }
  0x35   : > { %s212_s2 = scalar_lea.vmem [#allocation3], %s771_s24 }
  0x36   : > { %1138 = dma.done.wait (%p1348_p12), %s209_s9, 256  }
  0x37   : > { %1140 = vsyncadd (%p1348_p12), %s209_s9, 4294967040 }
  0x38   : > { %1142 = dma.done.wait (%p53_p10), [#allocation7], 512  }
  0x39   : > { %1144 = vsyncadd (%p53_p10), [#allocation7], 4294966784  ;;  %s1404_s1 = scalar_lea.vmem [#allocation8], %s210_s4 }
  0x3a   : > { %1146 = dma.done.wait (%p1348_p12), %s209_s9, 16  }
  0x3b   : > { %1148 = vsyncadd (%p1348_p12), %s209_s9, 4294967280  ;;  %s251_s20 = sand.u32 1, %s1159_s13   ;;  %p774_p8 = scmp.ne.s32.totalorder %s1179_s18, 0 }
  0x3c   : > { %s1413_s23 = sshll.u32 %s251_s20, 3 }
  0x3d   : > { %s253_s5 = scalar_lea.vmem [#allocation9], %s1413_s23  ;;  %257 = sbr.rel (%p774_p8) target bundleno = 202 (0xca), region = 48 }
  0x42   : > { %v263_v0 = vld [vmem:[#allocation6 + $0x18] sm:$0xff]  ;;  %v262_v1 = vld [vmem:[#allocation6 + $0x10] sm:$0xff]  ;;  %v261_v2 = vld [vmem:[#allocation6 + $0x8] sm:$0xff]  ;;  %vm264_vm0 = vcmask 261120   ;;  %vm294_vm1 = vcmask 785408  }
  0x43   : > { %283 = vmatpush.msra.mxu0 %v263_v0  ;;  %800 = vmatpush.msra.mxu1 %v263_v0  ;;  %v260_v3 = vld [vmem:[#allocation6] sm:$0xff]  ;;  %v259_v5 = vld [vmem:[%s212_s2 + $0x8] sm:$0xff] }
  0x44   : > { %v258_v4 = vld [vmem:[%s212_s2] sm:$0xff] }
  0x45   : > { %284 = vmatpush.msra.mxu0 %v262_v1  ;;  %801 = vmatpush.msra.mxu1 %v262_v1 }
  0x47   : > { %285 = vmatpush.msra.mxu0 %v261_v2  ;;  %802 = vmatpush.msra.mxu1 %v261_v2 }
  0x49   : > { %286 = vmatpush.msra.mxu0 %v260_v3  ;;  %803 = vmatpush.msra.mxu1 %v260_v3 }
  0x4a   : > { %775 = vmatmul.msk.f32.vlgmr.msra.gmra.mxu0 %vm264_vm0, %v258_v4  ;;  %776 = vmatmul.msk.f32.vlgmr.msra.gmra.mxu1 %vm264_vm0, %v259_v5 }
  0xc7   : > { %v288_v6 = vpop.f32.mrf.mxu0  ;;  %v291_v7 = vpop.f32.mrf.mxu1 }
  0xc8   : > { %295 = vst.msk [vmem:[#allocation2] sm:$0xff] %vm294_vm1, %v288_v6 }
  0xc9   : > { %296 = vst.msk [vmem:[#allocation2 + $0x8] sm:$0xff] %vm294_vm1, %v291_v7 }
  0xca PF: > { %s1200_s25 = smov 96   ;;  %vm312_vm2 = vcmask 64512   ;;  %s777_s2 = sshll.u32 %s1179_s18, 3  ;;  %v958_v14 = vld [vmem:[%s1404_s1] ss:$0 sm:$0xff]  ;;  %vm340_vm3 = vcmask 130048  }
  0xcb   : > { %s299_s8 = scalar_lea.vmem [#allocation2], %s777_s2  ;;  %s1201_s6 = smov 120   ;;  %vm629_vm4 = vcmask 195584   ;;  %vm631_vm5 = vcmask 261120  }
  0xcc   : > { %s1202_s26 = smov 88   ;;  %s1203_s10 = smov 64  }
  0xcd   : > { %s1204_s30 = smov 80   ;;  %s1205_s28 = smov 72  }
  0xce   : > { %s1206_s7 = smov 104   ;;  %s1207_s29 = smov 112  }
  0xcf   : > { %v301_v9 = vld [vmem:[#allocation2] sm:$0xff]  ;;  %s1208_s0 = smov 56   ;;  %s1209_s4 = smov 40  }
  0xd0   : > { %v302_v8 = vld [vmem:[#allocation2 + $0x8] sm:$0xff]  ;;  %v300_v12 = vld [vmem:[%s299_s8] sm:$0xff]  ;;  %389 = vrot.lane.b32.xlu2 %v301_v9, %s1202_s26  ;;  %s1210_s24 = smov 48   ;;  %s1211_s9 = smov 8  }
  0xd1   : > { %310 = vrot.lane.b32.xlu0 %v302_v8, %s1200_s25  ;;  %v1421_v13 = vpack.i.bf16 %v301_v9, %v302_v8  ;;  %s1212_s1 = smov 24   ;;  %s795_s2 = sshll.u32 %s1183_s19, 1 }
  0xd2   : > { %s644_s8 = sadd.s32 %s1179_s18, %s795_s2  ;;  %s634_s18 = scalar_lea.sflag [#allocation5], %s251_s20 }
  0xd8   : > { %547 = vrot.lane.b32.xlu2 %v302_v8, %s1205_s28 }
  0xd9   : > { %308 = vrot.lane.b32.xlu0 %v301_v9, %s1200_s25  ;;  %s1213_s25 = smov 16  }
  0xe1   : > { %385 = vrot.lane.b32.xlu0 %v300_v12, %s1201_s6  ;;  %s796_s6 = sshll.u32 %s644_s8, 3 }
  0xe9   : > { %939 = vrot.lane.b32.xlu0 %v1421_v13, %s1203_s10 }
  0xf1   : > { %469 = vrot.lane.b32.xlu0 %v302_v8, %s1204_s30 }
  0xf9   : > { %545 = vrot.lane.b32.xlu0 %v301_v9, %s1205_s28  ;;  %s648_s28 = sshll.u32 %s253_s5, 4  ;;  %s649_s28 = int_to_ptr.vmem [resolvable:$true] %s648_s28 }
 0x12a   : > { %v390_v20 = vpop.permute.xlu2 %389 }
 0x132   : > { %v548_v24 = vpop.permute.xlu2 %547 }
 0x143   : > { %v311_v10 = vpop.permute.xlu0 %310 }
 0x144   : > { %778 = vmatpush.xpose.msk.msra.mxu0 %vm312_vm2, %v311_v10 }
 0x14b   : > { %v309_v11 = vpop.permute.xlu0 %308 }
 0x14c   : > { %779 = vmatpush.xpose.msk.msra.mxu0 %vm312_vm2, %v309_v11 }
 0x14f   : > { %780 = vmatmul.msk.f32.vlgmr.msra.gmra.mxu0 %vm312_vm2, %v300_v12 }
 0x150   : > { %790 = vmatpush.xpose.msk.msrb.mxu0 %vm312_vm2, %v548_v24 }
 0x153   : > { %v386_v18 = vpop.permute.xlu0 %385 }
 0x15b   : > { %v940_v19 = vpop.permute.xlu0 %939 }
 0x15c   : > { %v941_v32 = vunpack.i.l.bf16 %v940_v19  ;;  %v942_v33 = vunpack.i.h.bf16 %v940_v19 }
 0x15e   : > { %375 = vmatpush.msra.mxu1 %v941_v32 }
 0x160   : > { %376 = vmatpush.msra.mxu1 %v942_v33 }
 0x163   : > { %v470_v23 = vpop.permute.xlu0 %469 }
 0x164   : > { %786 = vmatpush.xpose.msk.msrb.mxu1 %vm312_vm2, %v470_v23 }
 0x16b   : > { %v546_v26 = vpop.permute.xlu0 %545 }
 0x16c   : > { %791 = vmatpush.xpose.msk.msrb.mxu0 %vm312_vm2, %v546_v26 }
 0x1cc   : > { %v337_v15 = vpop.f32.mrf.mxu0 }
 0x1cd   : > { %v338_v16 = vadd.f32 %v958_v14, %v337_v15 }
 0x1cf   : > { %v341_v17 = vsel %vm340_vm3, %v338_v16, -inf }
 0x1d0   : > { %342 = vmax.xlane.f32.xlu1 %v341_v17 }
 0x1e9   : > { %391 = vrot.lane.b32.xlu1 %v302_v8, %s1202_s26 }
 0x1f1   : > { %467 = vrot.lane.b32.xlu1 %v301_v9, %s1204_s30  ;;  %s646_s30 = scalar_lea.hbm %s1515_s3, %s796_s6 }
 0x1f9   : > { %541 = vrot.lane.b32.xlu1 %v300_v12, %s1206_s7  ;;  %s650_s7 = sshll.u32 %s646_s30, 4  ;;  %s651_s7 = int_to_ptr.hbm [resolvable:$true] %s650_s7 }
 0x1fa   : > { %s1079_s19 = sshra.s32 %s651_s7, 4  ;;  %s1080_s19 = int_to_ptr.hbm [resolvable:$true] %s1079_s19 }
 0x1fb   : > { %p1086_p13 = scmp.lt.s32.totalorder %s1080_s19, %s1515_s3 }
 0x243   : > { %v343_v21 = vpop.xlane.xlu1 %342 }
 0x244   : > { %v344_v22 = vsub.f32 %v338_v16, %v343_v21 }
 0x246   : > { %v345_v25 = vmul.f32 1.442695, %v344_v22 }
 0x248   : > { %959 = vpow2.f32 %v345_v25 }
 0x24e   : > { %v960_v27 = vpop.eup %959 }
 0x24f   : > { %v347_v28 = vsel %vm340_vm3, %v960_v27, 0.0 }
 0x250   : > { %348 = vadd.xlane.f32.xlu2 %v347_v28 }
 0x25b   : > { %v392_v29 = vpop.permute.xlu1 %391 }
 0x25c   : > { %782 = vmatpush.xpose.msk.msra.mxu2 %vm312_vm2, %v392_v29 }
 0x260   : > { %783 = vmatpush.xpose.msk.msra.mxu2 %vm312_vm2, %v390_v20 }
 0x263   : > { %784 = vmatmul.msk.f32.vlgmr.msra.gmra.mxu2 %vm312_vm2, %v386_v18  ;;  %v468_v30 = vpop.permute.xlu1 %467 }
 0x264   : > { %787 = vmatpush.xpose.msk.msrb.mxu1 %vm312_vm2, %v468_v30 }
 0x268   : > { %463 = vrot.lane.b32.xlu2 %v300_v12, %s1207_s29  ;;  %s1081_s29 = scalar_lea.hbm %s1080_s19, 8 }
 0x269   : > { %p1082_p10 = scmp.ne.s32.totalorder %s1080_s19, %s1081_s29 }
 0x26b   : > { %v542_v31 = vpop.permute.xlu1 %541  ;;  %p1083_p11 = pnand %p1082_p10, %p1357_p0 }
 0x26c   : > { %792 = vmatmul.msk.f32.vlgmr.msrb.gmra.mxu0 %vm312_vm2, %v542_v31 }
 0x26d   : > { %p1084_p12 = pneg %p1083_p11 }
 0x2c3   : > { %v349_v34 = vpop.xlane.xlu2 %348 }
 0x2c4   : > { %961 = vrcp.f32 %v349_v34 }
 0x2ca   : > { %v962_v35 = vpop.eup %961 }
 0x2cb   : > { %v351_v36 = vmul.f32 %v962_v35, %v960_v27  ;;  %v464_v37 = vpop.permute.xlu2 %463 }
 0x2cd   : > { %781 = vmatmul.msk.f32.vlgmr.msra.gmra.mxu1 %vm340_vm3, %v351_v36 }
 0x2d5   : > { %788 = vmatmul.msk.f32.vlgmr.msrb.gmra.mxu1 %vm312_vm2, %v464_v37 }
 0x2e6   : > { %v416_v38 = vpop.f32.mrf.mxu2 }
 0x2e7   : > { %v417_v39 = vadd.f32 %v958_v14, %v416_v38 }
 0x2e9   : > { %v419_v40 = vsel %vm340_vm3, %v417_v39, -inf  ;;  %v572_v41 = vpop.f32.mrf.mxu0 }
 0x2ea   : > { %420 = vmax.xlane.f32.xlu0 %v419_v40  ;;  %v573_v42 = vadd.f32 %v958_v14, %v572_v41 }
 0x2ec   : > { %v575_v43 = vsel %vm340_vm3, %v573_v42, -inf }
 0x2ed   : > { %576 = vmax.xlane.f32.xlu1 %v575_v43 }
 0x2fe   : > { %944 = vrot.lane.b32.xlu0 %v1421_v13, %s1208_s0 }
 0x34a   : > { %v1440_v44 = vpop.f32.mrf.mxu1 }
 0x352   : > { %v494_v45 = vpop.f32.mrf.mxu1 }
 0x353   : > { %v495_v46 = vadd.f32 %v958_v14, %v494_v45 }
 0x355   : > { %v497_v47 = vsel %vm340_vm3, %v495_v46, -inf }
 0x356   : > { %498 = vmax.xlane.f32.xlu2 %v497_v47 }
 0x35d   : > { %v421_v48 = vpop.xlane.xlu0 %420 }
 0x35e   : > { %v422_v49 = vsub.f32 %v417_v39, %v421_v48 }
 0x360   : > { %v423_v50 = vmul.f32 1.442695, %v422_v49  ;;  %v577_v51 = vpop.xlane.xlu1 %576 }
 0x361   : > { %v578_v52 = vsub.f32 %v573_v42, %v577_v51 }
 0x362   : > { %963 = vpow2.f32 %v423_v50 }
 0x363   : > { %v579_v53 = vmul.f32 1.442695, %v578_v52 }
 0x365   : > { %965 = vpow2.f32 %v579_v53 }
 0x368   : > { %v964_v54 = vpop.eup %963 }
 0x369   : > { %v425_v55 = vsel %vm340_vm3, %v964_v54, 0.0 }
 0x36a   : > { %426 = vadd.xlane.f32.xlu2 %v425_v55 }
 0x36b   : > { %v966_v56 = vpop.eup %965 }
 0x36c   : > { %v581_v57 = vsel %vm340_vm3, %v966_v56, 0.0 }
 0x370   : > { %v945_v58 = vpop.permute.xlu0 %944 }
 0x371   : > { %v946_v59 = vunpack.i.l.bf16 %v945_v58  ;;  %v947_v60 = vunpack.i.h.bf16 %v945_v58 }
 0x372   : > { %582 = vadd.xlane.f32.xlu2 %v581_v57 }
 0x373   : > { %453 = vmatpush.msra.mxu3 %v946_v59 }
 0x375   : > { %454 = vmatpush.msra.mxu3 %v947_v60 }
 0x38a   : > { %954 = vrot.lane.b32.xlu2 %v1421_v13, %s1209_s4 }
 0x3c9   : > { %v499_v61 = vpop.xlane.xlu2 %498 }
 0x3ca   : > { %v500_v62 = vsub.f32 %v495_v46, %v499_v61 }
 0x3cc   : > { %v501_v63 = vmul.f32 1.442695, %v500_v62 }
 0x3ce   : > { %967 = vpow2.f32 %v501_v63 }
 0x3d4   : > { %v968_v0 = vpop.eup %967 }
 0x3d5   : > { %v503_v1 = vsel %vm340_vm3, %v968_v0, 0.0 }
 0x3d6   : > { %504 = vadd.xlane.f32.xlu1 %v503_v1 }
 0x3dd   : > { %v427_v2 = vpop.xlane.xlu2 %426 }
 0x3de   : > { %969 = vrcp.f32 %v427_v2 }
 0x3e4   : > { %v970_v3 = vpop.eup %969 }
 0x3e5   : > { %v583_v4 = vpop.xlane.xlu2 %582  ;;  %v429_v5 = vmul.f32 %v970_v3, %v964_v54 }
 0x3e6   : > { %971 = vrcp.f32 %v583_v4 }
 0x3e7   : > { %785 = vmatmul.msk.f32.vlgmr.msra.gmra.mxu3 %vm340_vm3, %v429_v5 }
 0x3ec   : > { %v972_v7 = vpop.eup %971 }
 0x3ed   : > { %v955_v6 = vpop.permute.xlu2 %954  ;;  %v585_v10 = vmul.f32 %v972_v7, %v966_v56 }
 0x3ee   : > { %v957_v8 = vunpack.i.h.bf16 %v955_v6  ;;  %v956_v9 = vunpack.i.l.bf16 %v955_v6 }
 0x3ef   : > { %949 = vrot.lane.b32.xlu1 %v1421_v13, %s1210_s24  ;;  %s1085_s24 = scalar_lea.hbm %s1515_s3, 32 }
 0x3f0   : > { %609 = vmatpush.msrb.mxu2 %v956_v9  ;;  %p1087_p1 = scmp.lt.s32.totalorder %s1085_s24, %s1081_s29 }
 0x3f2   : > { %610 = vmatpush.msrb.mxu2 %v957_v8  ;;  %p1088_p2 = por %p1087_p1, %p1086_p13 }
 0x3f3   : > { %793 = vmatmul.msk.f32.vlgmr.msrb.gmra.mxu2 %vm340_vm3, %v585_v10 }
 0x3f4   : > { %p1089_p3 = pnand %p1088_p2, %p1084_p12 }
 0x449   : > { %v505_v11 = vpop.xlane.xlu1 %504 }
 0x44a   : > { %973 = vrcp.f32 %v505_v11 }
 0x450   : > { %v974_v14 = vpop.eup %973 }
 0x451   : > { %v507_v17 = vmul.f32 %v974_v14, %v968_v0 }
 0x461   : > { %v950_v12 = vpop.permute.xlu1 %949 }
 0x462   : > { %v951_v15 = vunpack.i.l.bf16 %v950_v12  ;;  %v952_v16 = vunpack.i.h.bf16 %v950_v12 }
 0x464   : > { %531 = vmatpush.msrb.mxu3 %v951_v15 }
 0x466   : > { %532 = vmatpush.msrb.mxu3 %v952_v16 }
 0x467   : > { %789 = vmatmul.msk.f32.vlgmr.msrb.gmra.mxu3 %vm340_vm3, %v507_v17 }
 0x46a   : > { %v456_v13 = vpop.f32.mrf.mxu3 }
 0x46b   : > { %616 = vrot.lane.b32.xlu0 %v456_v13, %s1211_s9 }
 0x476   : > { %v612_v18 = vpop.f32.mrf.mxu2 }
 0x477   : > { %624 = vrot.lane.b32.xlu1 %v612_v18, %s1212_s1 }
 0x4dd   : > { %v617_v20 = vpop.permute.xlu0 %616 }
 0x4de   : > { %v627_v21 = vsel %vm312_vm2, %v1440_v44, %v617_v20 }
 0x4e9   : > { %v625_v23 = vpop.permute.xlu1 %624 }
 0x4ea   : > { %v534_v19 = vpop.f32.mrf.mxu3 }
 0x4eb   : > { %620 = vrot.lane.b32.xlu0 %v534_v19, %s1213_s25 }
 0x55d   : > { %v621_v22 = vpop.permute.xlu0 %620 }
 0x55e   : > { %v628_v24 = vsel %vm340_vm3, %v627_v21, %v621_v22 }
 0x55f   : > { %v630_v25 = vsel %vm629_vm4, %v628_v24, %v625_v23 }
 0x560   : > { %632 = vst.msk [vmem:[%s253_s5] sm:$0xff] %vm631_vm5, %v630_v25 }
 0x561   : > { %1092 = shalt.err (!%p1089_p3)
}
 0x562   : > { %812 = dma.vmem_to_hbm [thread:$0]  (%p1357_p0), %s649_s28, 128, %s651_s7, %s634_s18  }
 0x563 PF: > { %p832_p4 = scmp.ge.s32.totalorder %s1195_s22, 2  ;;  %s662_s20 = sand.u32 1, %s1155_s12  }
 0x564   : > { %s663_s23 = scalar_lea.sflag [#allocation5], %s662_s20 }
 0x565   : > { %p826_p6 = pnand %p832_p4, %p1365_p5 }
 0x567   : > { %p827_p7 = pneg %p826_p6 }
 0x569   : > { %1150 = dma.done.wait (%p827_p7), %s663_s23, 128  }
 0x56a   : > { %1152 = vsyncadd (%p827_p7), %s663_s23, 4294967168  ;;  %s20_s22 = sadd.s32 1, %s1195_s22   ;;  %s1541_s27 = sld [smem:[#allocation17_spill]] }
 0x56b   : > { %p17_p9 = scmp.ge.s32.totalorder %s20_s22, 6   ;;  %s1542_s18 = sld [smem:[#allocation14_spill]] }
 0x56c   : > { %s1543_s20 = sld [smem:[#allocation15_spill]]  ;;  %s1545_s12 = smov %s1159_s13 }
 0x56d   : > { %s1544_s5 = sld [smem:[#allocation16_spill]]  ;;  %s1546_s13 = smov %s1163_s14 }
 0x56e   : > { %s1547_s14 = smov %s1355_s11  ;;  %s1548_s15 = smov %s1171_s16 }
 0x56f   : > { %s1549_s16 = smov %s1175_s17  ;;  %s1551_s19 = smov %s1191_s21 }
 0x570   : > { %s1550_s17 = smov %s1541_s27  ;;  %19 = sbr.rel (!%p17_p9) target bundleno = 14 (0xe), region = 97 }
 0x573   : > { %s1552_s21 = smov %s1544_s5 }
 0x575   :  { %669 = vsyncpa [#allocation4], 1 }
 0x576   :  { %671 = vsyncpa [#allocation4 + $0x1], 1 }
 0x577   :  { %672 = vsyncpa [#allocation7], 1 }
 0x578   :  { %673 = vsyncpa [#allocation5], 1 }
 0x579   :  { %675 = vsyncpa [#allocation5 + $0x1], 1 }

</bundles_post_ra>
